<compile_context>
chip_gen: v7x
topology: tpu7x:2x2x1
jax: 0.10.0
libtpu: 0.0.40
codegen_flags: <defaults>
</compile_context>

<pallas_src>
import math

import jax
import jax.numpy as jnp
from jax.experimental import pallas as pl
from jax.experimental.pallas import tpu as pltpu

HIDDEN = 256
LANE = 128
MAX_LANE_TILE = 2048


def _round_up(n, m):
    return ((n + m - 1) // m) * m


def _num_tensorcores():
    """Best-effort TensorCores-per-chip detection (perf heuristic only)."""
    try:
        kind = jax.devices()[0].device_kind.lower()
    except Exception:
        return 1
    if "lite" in kind or "v5e" in kind or "v6" in kind:
        return 1                                  # v5e / v6e: 1 TC per chip
    if any(t in kind for t in ("v4", "v5", "v7")):
        return 2                                  # v4 / v5p / v7x: 2 TCs
    return 1


def _qnet_kernel(xa_ref, w1_ref, b1_ref, w2_ref, b2_ref, w3_ref, b3_ref, o_ref):
    # xa_ref: (d_pad, tb) bf16, batch on lanes.  Layers 1 & 2: MXU matmuls
    # with f32 accumulation; bias-add / ReLU on the VPU.
    h1 = jnp.dot(w1_ref[...], xa_ref[...],
                 preferred_element_type=jnp.float32) + b1_ref[...]
    h1 = jnp.maximum(h1, 0.0).astype(jnp.bfloat16)

    h2 = jnp.dot(w2_ref[...], h1,
                 preferred_element_type=jnp.float32) + b2_ref[...]
    h2 = jnp.maximum(h2, 0.0)

    # Head (256 -> 1): VPU multiply + sublane reduce (XLU has free slots here);
    # scalar bias from SMEM.  q is a lane-dense (1, tb) row -> unmasked vst.
    q = jnp.sum(h2 * w3_ref[...], axis=0, keepdims=True) + b3_ref[0]
    o_ref[...] = q.astype(o_ref.dtype)


def qnetwork_forward(x, a, params, *, num_cores=None, max_lane_tile=MAX_LANE_TILE):
    """x: (B, obs_dim), a: (B, act_dim).  Returns (B, 1) float32."""
    w1, b1, w2, b2, w3, b3 = params
    B, obs_dim = x.shape
    act_dim = a.shape[1]
    d_in = obs_dim + act_dim
    d_pad = w1.shape[1]                          # zero-padded fc1 input width

    if num_cores is None:
        num_cores = _num_tensorcores()

    # --- Grid shaping -------------------------------------------------------
    # Batch is the lane axis, so every tile must be a multiple of 128 lanes.
    #   * 2-TC chips: >=2 blocks (when the batch is big enough) so the
    #     "parallel" grid axis shards across both TensorCores.
    #   * 1-TC chips: a single grid step (no fixed per-step overhead).
    max_lane_tile = max(LANE, _round_up(max_lane_tile, LANE))
    n_blocks = 1
    if num_cores > 1 and B > LANE:
        n_blocks = num_cores
    n_blocks = max(n_blocks, pl.cdiv(_round_up(B, LANE), max_lane_tile))
    b_pad = _round_up(B, n_blocks * LANE)
    tb = b_pad // n_blocks

    # --- Pack activations: (B, obs)+(B, act) -> (d_pad, b_pad) bf16 ---------
    # Zero padding fuses the concat into layer 1 (padded W1 columns are zero).
    xa = jnp.concatenate([x.astype(jnp.float32), a.astype(jnp.float32)], axis=1)
    xa = jnp.pad(xa, ((0, b_pad - B), (0, d_pad - d_in)))
    xa_t = xa.astype(jnp.bfloat16).T                         # (d_pad, b_pad)

    flops = 2 * b_pad * (d_pad * HIDDEN + HIDDEN * HIDDEN + HIDDEN)
    bytes_accessed = (
        xa_t.size * 2 + b_pad * 4                            # activations in / q out
        + (w1.size + w2.size) * 2                            # bf16 matmul weights
        + (b1.size + b2.size + w3.size + b3.size) * 4)       # f32 biases / head

    grid_spec = pl.GridSpec(
        grid=(n_blocks,),
        in_specs=[
            pl.BlockSpec((d_pad, tb), lambda i: (0, i)),         # xa lane tile
            pl.BlockSpec((HIDDEN, d_pad), lambda i: (0, 0)),     # W1 (resident)
            pl.BlockSpec((HIDDEN, 1), lambda i: (0, 0)),         # b1 column
            pl.BlockSpec((HIDDEN, HIDDEN), lambda i: (0, 0)),    # W2 (resident)
            pl.BlockSpec((HIDDEN, 1), lambda i: (0, 0)),         # b2 column
            pl.BlockSpec((HIDDEN, 1), lambda i: (0, 0)),         # W3 column
            pl.BlockSpec(memory_space=pltpu.MemorySpace.SMEM),   # b3 scalar
        ],
        out_specs=pl.BlockSpec((1, tb), lambda i: (0, i)),       # lane-dense q row
    )

    out = pl.pallas_call(
        _qnet_kernel,
        out_shape=jax.ShapeDtypeStruct((1, b_pad), jnp.float32),
        grid_spec=grid_spec,
        compiler_params=pltpu.CompilerParams(
            dimension_semantics=("parallel",)),
        cost_estimate=pl.CostEstimate(
            flops=flops, transcendentals=0, bytes_accessed=bytes_accessed),
    )(xa_t, w1, b1, w2, b2, w3, b3)
    return out[0, :B].reshape(B, 1)


def init_params(key, obs_dim, act_dim, hidden=HIDDEN):
    """torch.nn.Linear default init: W, b ~ U(-1/sqrt(fan_in), 1/sqrt(fan_in)).
    Weights are kept in the (out, in) orientation the kernel consumes
    (batch-on-lanes: h = W @ x_T); W1's input dim is zero-padded so the x|a
    concat fuses into a single layer-1 matmul.  Matmul weights in bf16,
    biases / head column in f32."""
    keys = jax.random.split(key, 6)
    d_in = obs_dim + act_dim
    d_pad = _round_up(d_in, 16)

    def linear(kw, kb, fan_in, fan_out):
        bound = 1.0 / math.sqrt(fan_in)
        w = jax.random.uniform(kw, (fan_out, fan_in), jnp.float32, -bound, bound)
        b = jax.random.uniform(kb, (fan_out,), jnp.float32, -bound, bound)
        return w, b

    w1, b1 = linear(keys[0], keys[1], d_in, hidden)
    w2, b2 = linear(keys[2], keys[3], hidden, hidden)
    w3, b3 = linear(keys[4], keys[5], hidden, 1)

    w1p = jnp.pad(w1, ((0, 0), (0, d_pad - d_in))).astype(jnp.bfloat16)
    return (w1p,                              # (256, d_pad) bf16
            b1.reshape(hidden, 1),            # (256, 1) f32
            w2.astype(jnp.bfloat16),          # (256, 256) bf16
            b2.reshape(hidden, 1),            # (256, 1) f32
            w3.reshape(hidden, 1),            # (256, 1) f32 head column
            b3.reshape(1))                    # (1,) f32 SMEM scalar


def qnetwork_reference(x, a, params):
    """Pure-JAX reference with the same numerics (bf16 matmuls, f32 accum)."""
    w1, b1, w2, b2, w3, b3 = params
    d_in = x.shape[1] + a.shape[1]
    xa = jnp.concatenate([x, a], axis=1).astype(jnp.bfloat16)
    h1 = jnp.maximum(
        jnp.dot(xa, w1[:, :d_in].T, preferred_element_type=jnp.float32)
        + b1[:, 0], 0.0)
    h2 = jnp.maximum(
        jnp.dot(h1.astype(jnp.bfloat16), w2.T,
                preferred_element_type=jnp.float32) + b2[:, 0], 0.0)
    return jnp.sum(h2 * w3[:, 0], axis=-1, keepdims=True) + b3[0]


if __name__ == "__main__":
    key = jax.random.PRNGKey(0)
    k_x, k_a, k_p, k_x2, k_a2 = jax.random.split(key, 5)

    # Small shapes consistent with a continuous-control env:
    # batch=8, obs_dim=17, act_dim=6  ->  fc1 input dim = 23.
    B, obs_dim, act_dim = 8, 17, 6
    x = jax.random.normal(k_x, (B, obs_dim), jnp.float32)
    a = jax.random.normal(k_a, (B, act_dim), jnp.float32)
    params = init_params(k_p, obs_dim, act_dim)

    q = jax.block_until_ready(qnetwork_forward(x, a, params))
    q_ref = qnetwork_reference(x, a, params)
    assert q.shape == (B, 1), q.shape
    assert jnp.allclose(q, q_ref, atol=2e-2, rtol=2e-2), "mismatch (small batch)"

    # Training-sized batch: default grid shaping (single step on 1-TC chips).
    B2 = 1000
    x2 = jax.random.normal(k_x2, (B2, obs_dim), jnp.float32)
    a2 = jax.random.normal(k_a2, (B2, act_dim), jnp.float32)
    q2 = jax.block_until_ready(qnetwork_forward(x2, a2, params))
    q2_ref = qnetwork_reference(x2, a2, params)
    assert q2.shape == (B2, 1), q2.shape
    assert jnp.allclose(q2, q2_ref, atol=2e-2, rtol=2e-2), "mismatch (large batch)"

    # Forced 2-block "parallel" grid (the v4/v5p/v7x megacore path).
    q3 = jax.block_until_ready(qnetwork_forward(x2, a2, params, num_cores=2))
    assert jnp.allclose(q3, q2_ref, atol=2e-2, rtol=2e-2), "mismatch (2-block grid)"

    print("KERNEL_OK")
</pallas_src>

<mosaic_0001>
module attributes {stable_mosaic.version = 11 : i64} {
  func.func @_qnet_kernel(%arg0: i32, %arg1: memref<32x128xbf16, #tpu.memory_space<vmem>>, %arg2: memref<256x32xbf16, #tpu.memory_space<vmem>>, %arg3: memref<256x1xf32, #tpu.memory_space<vmem>>, %arg4: memref<256x256xbf16, #tpu.memory_space<vmem>>, %arg5: memref<256x1xf32, #tpu.memory_space<vmem>>, %arg6: memref<256x1xf32, #tpu.memory_space<vmem>>, %arg7: memref<1xf32, #tpu.memory_space<smem>>, %arg8: memref<1x128xf32, #tpu.memory_space<vmem>>) attributes {dimension_semantics = [#tpu.dimension_semantics<parallel>], iteration_bounds = array<i64: 1>, scalar_prefetch = 0 : i64, scratch_operands = 0 : i64, tpu.core_type = #tpu.core_type<tc>, window_params = [{transform_indices = @transform_0, window_bounds = array<i64: 32, 128>}, {pipeline_mode = #tpu.pipeline_mode<synchronous>, transform_indices = @transform_1, window_bounds = array<i64: 256, 32>}, {pipeline_mode = #tpu.pipeline_mode<synchronous>, transform_indices = @transform_2, window_bounds = array<i64: 256, 1>}, {pipeline_mode = #tpu.pipeline_mode<synchronous>, transform_indices = @transform_3, window_bounds = array<i64: 256, 256>}, {pipeline_mode = #tpu.pipeline_mode<synchronous>, transform_indices = @transform_4, window_bounds = array<i64: 256, 1>}, {pipeline_mode = #tpu.pipeline_mode<synchronous>, transform_indices = @transform_5, window_bounds = array<i64: 256, 1>}, {transform_indices = @transform_6, window_bounds = array<i64: 1>}, {transform_indices = @transform_7, window_bounds = array<i64: 1, 128>}]} {
    %c0 = arith.constant 0 : index
    %c0_0 = arith.constant 0 : index
    %0 = vector.load %arg2[%c0, %c0_0] : memref<256x32xbf16, #tpu.memory_space<vmem>>, vector<256x32xbf16>
    %c0_1 = arith.constant 0 : index
    %c0_2 = arith.constant 0 : index
    %1 = vector.load %arg1[%c0_1, %c0_2] : memref<32x128xbf16, #tpu.memory_space<vmem>>, vector<32x128xbf16>
    %cst = arith.constant dense<0.000000e+00> : vector<256x128xf32>
    %2 = tpu.matmul %0, %1, %cst {dimension_numbers = #tpu.dot_dimension_numbers<[1], [0], [0], [1], [0, 0, 1, 1], [], []>} : vector<256x32xbf16>, vector<32x128xbf16>, vector<256x128xf32> -> vector<256x128xf32>
    %c0_3 = arith.constant 0 : index
    %c0_4 = arith.constant 0 : index
    %3 = vector.load %arg3[%c0_3, %c0_4] : memref<256x1xf32, #tpu.memory_space<vmem>>, vector<256x1xf32>
    %4 = vector.broadcast %3 : vector<256x1xf32> to vector<256x128xf32>
    %5 = arith.addf %2, %4 : vector<256x128xf32>
    %cst_5 = arith.constant 0.000000e+00 : f32
    %6 = vector.broadcast %cst_5 : f32 to vector<256x128xf32>
    %7 = arith.maximumf %5, %6 : vector<256x128xf32>
    %8 = arith.truncf %7 : vector<256x128xf32> to vector<256x128xbf16>
    %c0_6 = arith.constant 0 : index
    %c0_7 = arith.constant 0 : index
    %9 = vector.load %arg4[%c0_6, %c0_7] : memref<256x256xbf16, #tpu.memory_space<vmem>>, vector<256x256xbf16>
    %cst_8 = arith.constant dense<0.000000e+00> : vector<256x128xf32>
    %10 = tpu.matmul %9, %8, %cst_8 {dimension_numbers = #tpu.dot_dimension_numbers<[1], [0], [0], [1], [0, 0, 1, 1], [], []>} : vector<256x256xbf16>, vector<256x128xbf16>, vector<256x128xf32> -> vector<256x128xf32>
    %c0_9 = arith.constant 0 : index
    %c0_10 = arith.constant 0 : index
    %11 = vector.load %arg5[%c0_9, %c0_10] : memref<256x1xf32, #tpu.memory_space<vmem>>, vector<256x1xf32>
    %12 = vector.broadcast %11 : vector<256x1xf32> to vector<256x128xf32>
    %13 = arith.addf %10, %12 : vector<256x128xf32>
    %cst_11 = arith.constant 0.000000e+00 : f32
    %14 = vector.broadcast %cst_11 : f32 to vector<256x128xf32>
    %15 = arith.maximumf %13, %14 : vector<256x128xf32>
    %c0_12 = arith.constant 0 : index
    %c0_13 = arith.constant 0 : index
    %16 = vector.load %arg6[%c0_12, %c0_13] : memref<256x1xf32, #tpu.memory_space<vmem>>, vector<256x1xf32>
    %17 = vector.broadcast %16 : vector<256x1xf32> to vector<256x128xf32>
    %18 = arith.mulf %15, %17 : vector<256x128xf32>
    %cst_14 = arith.constant dense<0.000000e+00> : vector<128xf32>
    %19 = vector.multi_reduction <add>, %18, %cst_14 [0] : vector<256x128xf32> to vector<128xf32>
    %20 = vector.shape_cast %19 : vector<128xf32> to vector<1x128xf32>
    %c0_15 = arith.constant 0 : index
    %21 = memref.load %arg7[%c0_15] : memref<1xf32, #tpu.memory_space<smem>>
    %22 = vector.broadcast %21 : f32 to vector<1x128xf32>
    %23 = arith.addf %20, %22 : vector<1x128xf32>
    %c0_16 = arith.constant 0 : index
    %c0_17 = arith.constant 0 : index
    %24 = vector.load %arg8[%c0_16, %c0_17] : memref<1x128xf32, #tpu.memory_space<vmem>>, vector<1x128xf32>
    tpu.vector_store %arg8[%c0_16, %c0_17], %23 {strides = array<i32>} : memref<1x128xf32, #tpu.memory_space<vmem>>, vector<1x128xf32>,
    return
  }
  func.func @transform_0(%arg0: i32) -> (i32, i32) {
    %c0_i32 = arith.constant 0 : i32
    %c0_i32_0 = arith.constant 0 : i32
    return %c0_i32, %arg0 : i32, i32
  }
  func.func @transform_1(%arg0: i32) -> (i32, i32) {
    %c0_i32 = arith.constant 0 : i32
    %c0_i32_0 = arith.constant 0 : i32
    %c0_i32_1 = arith.constant 0 : i32
    return %c0_i32, %c0_i32_0 : i32, i32
  }
  func.func @transform_2(%arg0: i32) -> (i32, i32) {
    %c0_i32 = arith.constant 0 : i32
    %c0_i32_0 = arith.constant 0 : i32
    %c0_i32_1 = arith.constant 0 : i32
    return %c0_i32, %c0_i32_0 : i32, i32
  }
  func.func @transform_3(%arg0: i32) -> (i32, i32) {
    %c0_i32 = arith.constant 0 : i32
    %c0_i32_0 = arith.constant 0 : i32
    %c0_i32_1 = arith.constant 0 : i32
    return %c0_i32, %c0_i32_0 : i32, i32
  }
  func.func @transform_4(%arg0: i32) -> (i32, i32) {
    %c0_i32 = arith.constant 0 : i32
    %c0_i32_0 = arith.constant 0 : i32
    %c0_i32_1 = arith.constant 0 : i32
    return %c0_i32, %c0_i32_0 : i32, i32
  }
  func.func @transform_5(%arg0: i32) -> (i32, i32) {
    %c0_i32 = arith.constant 0 : i32
    %c0_i32_0 = arith.constant 0 : i32
    %c0_i32_1 = arith.constant 0 : i32
    return %c0_i32, %c0_i32_0 : i32, i32
  }
  func.func @transform_6(%arg0: i32) -> i32 {
    %c0_i32 = arith.constant 0 : i32
    %c0_i32_0 = arith.constant 0 : i32
    return %c0_i32 : i32
  }
  func.func @transform_7(%arg0: i32) -> (i32, i32) {
    %c0_i32 = arith.constant 0 : i32
    %c0_i32_0 = arith.constant 0 : i32
    return %c0_i32, %arg0 : i32, i32
  }
}

</mosaic_0001>

<bundles_post_ra>
// kernel: tpu_custom_call.1
= control target key start
LH: loop header
LB: loop body
LE: loop exit
PB: predicated region body
PF: predicated region fallthrough
CT: control target
= control target key end

     0   :  { %v1805_v2 = vmov 0   ;;  %vm349_vm0 = vcmask 261120   ;;  %s2546_s0 = inlined_call_operand.vmem [shape: bf16[32,128], index: 0, kind: input, shape index: {}]   ;;  %s2547_s1 = inlined_call_operand.vmem [shape: bf16[256,32], index: 1, kind: input, shape index: {}]   ;;  %s2548_s2 = inlined_call_operand.vmem [shape: f32[256,1], index: 2, kind: input, shape index: {}]   ;;  %s2549_s3 = inlined_call_operand.vmem [shape: bf16[256,256], index: 3, kind: input, shape index: {}]   ;;  %s2550_s4 = inlined_call_operand.vmem [shape: f32[256,1], index: 4, kind: input, shape index: {}]   ;;  %s2551_s5 = inlined_call_operand.vmem [shape: f32[256,1], index: 5, kind: input, shape index: {}]   ;;  %s2552_s6 = inlined_call_operand.<no memory space> [shape: f32[1], index: 6, kind: input, shape index: {}]   ;;  %s2553_s7 = inlined_call_operand.hbm [shape: f32[1,128], index: 7, kind: output, shape index: {}]  }
   0x1   :  { %v81_v0 = vld [vmem:[%s2548_s2 + $0x80] sm:$0xff]  ;;  %1714 = vset.pattern.permute.xlu1 %v1805_v2  ;;  %1713 = vset.pattern.permute.xlu0 %v1805_v2  ;;  %v82_v4 = vld [vmem:[%s2548_s2 + $0x88] sm:$0xff]  ;;  %v83_v8 = vld [vmem:[%s2548_s2 + $0x90] sm:$0xff] }
   0x2   :  { %v65_v1 = vld [vmem:[%s2548_s2] sm:$0xff]  ;;  %179 = vperm.xlu0 %1713, %v81_v0   ;;  %v66_v5 = vld [vmem:[%s2548_s2 + $0x8] sm:$0xff]  ;;  %v84_v9 = vld [vmem:[%s2548_s2 + $0x98] sm:$0xff] }
   0x3   :  { %v1715_v3 = vld [vmem:[%s2546_s0] sm:$0xff]   ;;  %99 = vperm.xlu1 %1714, %v65_v1   ;;  %v1716_v6 = vld [vmem:[%s2546_s0 + $0x8] sm:$0xff]   ;;  %v1719_v11 = vld [vmem:[%s2547_s1 + $0x10] sm:$0xff]  }
   0x4   :  { %1659 = vmatprep.subr.bf16.mxu0 %v1715_v3  ;;  %v1717_v7 = vld [vmem:[%s2547_s1] sm:$0xff]   ;;  %v1718_v10 = vld [vmem:[%s2547_s1 + $0x8] sm:$0xff]   ;;  %v67_v12 = vld [vmem:[%s2548_s2 + $0x10] sm:$0xff] }
   0x5   :  { %1660 = vmatpush3.bf16.msra.mxu0 %v1715_v3  ;;  %1663 = vmatprep.mubr.msk.bf16.mxu0 %vm349_vm0, %v1717_v7  ;;  %v68_v13 = vld [vmem:[%s2548_s2 + $0x18] sm:$0xff]  ;;  %v85_v14 = vld [vmem:[%s2548_s2 + $0xa0] sm:$0xff]  ;;  %v86_v15 = vld [vmem:[%s2548_s2 + $0xa8] sm:$0xff] }
   0x6   :  { %1661 = vmatprep.subr.bf16.mxu0 %v1716_v6  ;;  %184 = vperm.xlu0 %1713, %v82_v4   ;;  %v1720_v16 = vld [vmem:[%s2547_s1 + $0x18] sm:$0xff]   ;;  %v1721_v17 = vld [vmem:[%s2547_s1 + $0x20] sm:$0xff]   ;;  %v70_v19 = vld [vmem:[%s2548_s2 + $0x28] sm:$0xff] }
   0x7   :  { %104 = vperm.xlu1 %1714, %v66_v5   ;;  %v69_v18 = vld [vmem:[%s2548_s2 + $0x20] sm:$0xff]  ;;  %v87_v20 = vld [vmem:[%s2548_s2 + $0xb0] sm:$0xff]  ;;  %v88_v21 = vld [vmem:[%s2548_s2 + $0xb8] sm:$0xff] }
   0x8   :  { %v1722_v22 = vld [vmem:[%s2547_s1 + $0x28] sm:$0xff]   ;;  %v1723_v23 = vld [vmem:[%s2547_s1 + $0x30] sm:$0xff]   ;;  %v72_v25 = vld [vmem:[%s2548_s2 + $0x38] sm:$0xff] }
   0x9   :  { %1662 = vmatpush3.bf16.msra.mxu0 %v1716_v6  ;;  %v71_v24 = vld [vmem:[%s2548_s2 + $0x30] sm:$0xff]  ;;  %v89_v26 = vld [vmem:[%s2548_s2 + $0xc0] sm:$0xff]  ;;  %v90_v27 = vld [vmem:[%s2548_s2 + $0xc8] sm:$0xff] }
   0xa   :  { %189 = vperm.xlu0 %1713, %v83_v8   ;;  %v1724_v28 = vld [vmem:[%s2547_s1 + $0x38] sm:$0xff]   ;;  %v1725_v29 = vld [vmem:[%s2547_s1 + $0x40] sm:$0xff]   ;;  %v74_v31 = vld [vmem:[%s2548_s2 + $0x48] sm:$0xff] }
   0xb   :  { %194 = vperm.xlu1 %1714, %v84_v9   ;;  %v73_v30 = vld [vmem:[%s2548_s2 + $0x40] sm:$0xff]  ;;  %v91_v32 = vld [vmem:[%s2548_s2 + $0xd0] sm:$0xff]  ;;  %v92_v33 = vld [vmem:[%s2548_s2 + $0xd8] sm:$0xff] }
   0xc   :  { %1664 = vmatmul.mubr.msk.bf16.vlgmr.msra.gmra.mrb[0].mxu0 %vm349_vm0, %v1718_v10  ;;  %v1726_v34 = vld [vmem:[%s2547_s1 + $0x48] sm:$0xff]   ;;  %v1727_v35 = vld [vmem:[%s2547_s1 + $0x50] sm:$0xff]   ;;  %v76_v37 = vld [vmem:[%s2548_s2 + $0x58] sm:$0xff] }
   0xd   :  { %1667 = vmatprep.mubr.msk.bf16.mxu0 %vm349_vm0, %v1719_v11  ;;  %v75_v36 = vld [vmem:[%s2548_s2 + $0x50] sm:$0xff]  ;;  %v93_v38 = vld [vmem:[%s2548_s2 + $0xe0] sm:$0xff]  ;;  %v94_v39 = vld [vmem:[%s2548_s2 + $0xe8] sm:$0xff] }
   0xe   :  { %109 = vperm.xlu0 %1713, %v67_v12   ;;  %v1728_v40 = vld [vmem:[%s2547_s1 + $0x58] sm:$0xff]   ;;  %v1729_v41 = vld [vmem:[%s2547_s1 + $0x60] sm:$0xff]   ;;  %v78_v43 = vld [vmem:[%s2548_s2 + $0x68] sm:$0xff] }
   0xf   :  { %114 = vperm.xlu1 %1714, %v68_v13   ;;  %v77_v42 = vld [vmem:[%s2548_s2 + $0x60] sm:$0xff]  ;;  %v95_v44 = vld [vmem:[%s2548_s2 + $0xf0] sm:$0xff]  ;;  %v96_v45 = vld [vmem:[%s2548_s2 + $0xf8] sm:$0xff] }
  0x10   :  { %v1730_v46 = vld [vmem:[%s2547_s1 + $0x68] sm:$0xff]   ;;  %v1731_v47 = vld [vmem:[%s2547_s1 + $0x70] sm:$0xff]   ;;  %v80_v49 = vld [vmem:[%s2548_s2 + $0x78] sm:$0xff] }
  0x11   :  { %v79_v48 = vld [vmem:[%s2548_s2 + $0x70] sm:$0xff] }
  0x12   :  { %199 = vperm.xlu0 %1713, %v85_v14  }
  0x13   :  { %204 = vperm.xlu1 %1714, %v86_v15  }
  0x14   :  { %1668 = vmatmul.mubr.msk.bf16.gmra.mrb[4].mxu0 %vm349_vm0, %v1720_v16 }
  0x15   :  { %1671 = vmatprep.mubr.msk.bf16.mxu0 %vm349_vm0, %v1721_v17 }
  0x16   :  { %119 = vperm.xlu0 %1713, %v69_v18  }
  0x17   :  { %124 = vperm.xlu1 %1714, %v70_v19  }
  0x1a   :  { %209 = vperm.xlu0 %1713, %v87_v20  }
  0x1b   :  { %214 = vperm.xlu1 %1714, %v88_v21  }
  0x1c   :  { %1672 = vmatmul.mubr.msk.bf16.gmra.mrb[8].mxu0 %vm349_vm0, %v1722_v22 }
  0x1d   :  { %1675 = vmatprep.mubr.msk.bf16.mxu0 %vm349_vm0, %v1723_v23 }
  0x1e   :  { %129 = vperm.xlu0 %1713, %v71_v24  }
  0x1f   :  { %134 = vperm.xlu1 %1714, %v72_v25  }
  0x22   :  { %219 = vperm.xlu0 %1713, %v89_v26  }
  0x23   :  { %224 = vperm.xlu1 %1714, %v90_v27  }
  0x24   :  { %1676 = vmatmul.mubr.msk.bf16.gmra.mrb[12].mxu0 %vm349_vm0, %v1724_v28 }
  0x25   :  { %1679 = vmatprep.mubr.msk.bf16.mxu0 %vm349_vm0, %v1725_v29 }
  0x26   :  { %139 = vperm.xlu0 %1713, %v73_v30  }
  0x27   :  { %144 = vperm.xlu1 %1714, %v74_v31  }
  0x2a   :  { %229 = vperm.xlu0 %1713, %v91_v32  }
  0x2b   :  { %234 = vperm.xlu1 %1714, %v92_v33  }
  0x2c   :  { %1680 = vmatmul.mubr.msk.bf16.gmra.mrb[16].mxu0 %vm349_vm0, %v1726_v34 }
  0x2d   :  { %1683 = vmatprep.mubr.msk.bf16.mxu0 %vm349_vm0, %v1727_v35 }
  0x2e   :  { %149 = vperm.xlu0 %1713, %v75_v36  }
  0x2f   :  { %154 = vperm.xlu1 %1714, %v76_v37  }
  0x32   :  { %239 = vperm.xlu0 %1713, %v93_v38  }
  0x33   :  { %244 = vperm.xlu1 %1714, %v94_v39  }
  0x34   :  { %1684 = vmatmul.mubr.msk.bf16.gmra.mrb[20].mxu0 %vm349_vm0, %v1728_v40 }
  0x35   :  { %1687 = vmatprep.mubr.msk.bf16.mxu0 %vm349_vm0, %v1729_v41 }
  0x36   :  { %159 = vperm.xlu0 %1713, %v77_v42  }
  0x37   :  { %164 = vperm.xlu1 %1714, %v78_v43  }
  0x3a   :  { %249 = vperm.xlu0 %1713, %v95_v44  }
  0x3b   :  { %254 = vperm.xlu1 %1714, %v96_v45  }
  0x3c   :  { %1688 = vmatmul.mubr.msk.bf16.gmra.mrb[24].mxu0 %vm349_vm0, %v1730_v46 }
  0x3d   :  { %1691 = vmatprep.mubr.msk.bf16.mxu0 %vm349_vm0, %v1731_v47 }
  0x3e   :  { %13 = vsyncpa [#allocation4], 0  ;;  %169 = vperm.xlu0 %1713, %v79_v48   ;;  %v639_v50 = vld [vmem:[%s2550_s4] sm:$0xff]  ;;  %v640_v51 = vld [vmem:[%s2550_s4 + $0x8] sm:$0xff]  ;;  %s1806_s9 = smov [#allocation3]  }
  0x3f   :  { %174 = vperm.xlu1 %1714, %v80_v49   ;;  %v1732_v52 = vld [vmem:[%s2547_s1 + $0x78] sm:$0xff]   ;;  %v641_v53 = vld [vmem:[%s2550_s4 + $0x10] sm:$0xff]  ;;  %v643_v55 = vld [vmem:[%s2550_s4 + $0x20] sm:$0xff]  ;;  %s1455_s10 = sshll.u32 %s1806_s9, 4  ;;  %s1456_s10 = int_to_ptr.vmem [resolvable:$true] %s1455_s10 }
  0x40   :  { %v642_v54 = vld [vmem:[%s2550_s4 + $0x18] sm:$0xff]  ;;  %v644_v56 = vld [vmem:[%s2550_s4 + $0x28] sm:$0xff]  ;;  %v645_v57 = vld [vmem:[%s2550_s4 + $0x30] sm:$0xff]  ;;  %s1781_s11 = scalar_lea.vmem %s1456_s10, 16  ;;  %s1785_s12 = scalar_lea.vmem %s1456_s10, 32 }
  0x41   :  { %v646_v58 = vld [vmem:[%s2550_s4 + $0x38] sm:$0xff]  ;;  %v647_v59 = vld [vmem:[%s2550_s4 + $0x40] sm:$0xff]  ;;  %v648_v60 = vld [vmem:[%s2550_s4 + $0x48] sm:$0xff]  ;;  %p1782_p0 = scmp.ne.s32.totalorder %s1456_s10, %s1781_s11  ;;  %p1786_p1 = scmp.lt.s32.totalorder %s1456_s10, %s1456_s10 }
  0x42   :  { %673 = vperm.xlu0 %1713, %v639_v50   ;;  %v649_v61 = vld [vmem:[%s2550_s4 + $0x50] sm:$0xff]  ;;  %v650_v62 = vld [vmem:[%s2550_s4 + $0x58] sm:$0xff]  ;;  %v651_v63 = vld [vmem:[%s2550_s4 + $0x60] sm:$0xff]  ;;  %p1787_p2 = scmp.lt.s32.totalorder %s1785_s12, %s1781_s11 }
  0x43   :  { %678 = vperm.xlu1 %1714, %v640_v51   ;;  %v652_v0 = vld [vmem:[%s2550_s4 + $0x68] sm:$0xff]  ;;  %v653_v1 = vld [vmem:[%s2550_s4 + $0x70] sm:$0xff]  ;;  %v654_v2 = vld [vmem:[%s2550_s4 + $0x78] sm:$0xff] }
  0x44   :  { %1692 = vmatmul.mubr.msk.bf16.gmra.mrb[28].mxu0 %vm349_vm0, %v1732_v52  ;;  %v655_v3 = vld [vmem:[%s2550_s4 + $0x80] sm:$0xff]  ;;  %v656_v4 = vld [vmem:[%s2550_s4 + $0x88] sm:$0xff]  ;;  %v657_v5 = vld [vmem:[%s2550_s4 + $0x90] sm:$0xff]  ;;  %p1788_p3 = por %p1787_p2, %p1786_p1 }
  0x45   :  { %v658_v6 = vld [vmem:[%s2550_s4 + $0x98] sm:$0xff]  ;;  %v659_v7 = vld [vmem:[%s2550_s4 + $0xa0] sm:$0xff]  ;;  %v660_v8 = vld [vmem:[%s2550_s4 + $0xa8] sm:$0xff] }
  0x46   :  { %683 = vperm.xlu0 %1713, %v641_v53   ;;  %v661_v9 = vld [vmem:[%s2550_s4 + $0xb0] sm:$0xff]  ;;  %v662_v10 = vld [vmem:[%s2550_s4 + $0xb8] sm:$0xff]  ;;  %v663_v11 = vld [vmem:[%s2550_s4 + $0xc0] sm:$0xff]  ;;  %p1789_p4 = pnand %p1788_p3, %p1782_p0 }
  0x47   :  { %688 = vperm.xlu1 %1714, %v642_v54   ;;  %v664_v12 = vld [vmem:[%s2550_s4 + $0xc8] sm:$0xff]  ;;  %v665_v13 = vld [vmem:[%s2550_s4 + $0xd0] sm:$0xff]  ;;  %v666_v14 = vld [vmem:[%s2550_s4 + $0xd8] sm:$0xff] }
  0x48   :  { %v1184_v15 = vld [vmem:[%s2551_s5] sm:$0xff]  ;;  %v1185_v16 = vld [vmem:[%s2551_s5 + $0x8] sm:$0xff]  ;;  %v1186_v17 = vld [vmem:[%s2551_s5 + $0x10] sm:$0xff] }
  0x49   :  { %v1187_v18 = vld [vmem:[%s2551_s5 + $0x18] sm:$0xff]  ;;  %v1188_v19 = vld [vmem:[%s2551_s5 + $0x20] sm:$0xff]  ;;  %v1189_v20 = vld [vmem:[%s2551_s5 + $0x28] sm:$0xff] }
  0x4a   :  { %693 = vperm.xlu0 %1713, %v643_v55   ;;  %v1190_v21 = vld [vmem:[%s2551_s5 + $0x30] sm:$0xff]  ;;  %v1191_v22 = vld [vmem:[%s2551_s5 + $0x38] sm:$0xff]  ;;  %v1192_v23 = vld [vmem:[%s2551_s5 + $0x40] sm:$0xff] }
  0x4b   :  { %698 = vperm.xlu1 %1714, %v644_v56   ;;  %v1193_v24 = vld [vmem:[%s2551_s5 + $0x48] sm:$0xff]  ;;  %v1194_v25 = vld [vmem:[%s2551_s5 + $0x50] sm:$0xff]  ;;  %v1195_v26 = vld [vmem:[%s2551_s5 + $0x58] sm:$0xff] }
  0x4c   :  { %v1196_v27 = vld [vmem:[%s2551_s5 + $0x60] sm:$0xff]  ;;  %v1197_v28 = vld [vmem:[%s2551_s5 + $0x68] sm:$0xff]  ;;  %v1198_v29 = vld [vmem:[%s2551_s5 + $0x70] sm:$0xff] }
  0x4d   :  { %v1199_v30 = vld [vmem:[%s2551_s5 + $0x78] sm:$0xff]  ;;  %v1200_v31 = vld [vmem:[%s2551_s5 + $0x80] sm:$0xff]  ;;  %v1201_v32 = vld [vmem:[%s2551_s5 + $0x88] sm:$0xff] }
  0x4e   :  { %703 = vperm.xlu0 %1713, %v645_v57   ;;  %v1202_v33 = vld [vmem:[%s2551_s5 + $0x90] sm:$0xff]  ;;  %v1203_v34 = vld [vmem:[%s2551_s5 + $0x98] sm:$0xff]  ;;  %v1204_v37 = vld [vmem:[%s2551_s5 + $0xa0] sm:$0xff] }
  0x4f   :  { %708 = vperm.xlu1 %1714, %v646_v58   ;;  %v1205_v38 = vld [vmem:[%s2551_s5 + $0xa8] sm:$0xff]  ;;  %v1206_v40 = vld [vmem:[%s2551_s5 + $0xb0] sm:$0xff]  ;;  %v1207_v41 = vld [vmem:[%s2551_s5 + $0xb8] sm:$0xff] }
  0x50   :  { %v1735_v43 = vld [vmem:[%s2549_s3 + $0x4] ss:$8 sps:$4 sm:$0xff]   ;;  %v1738_v46 = vld [vmem:[%s2549_s3 + $0x54] ss:$8 sps:$4 sm:$0xff]  }
  0x51   :  { %v1208_v44 = vld [vmem:[%s2551_s5 + $0xc0] sm:$0xff]  ;;  %v1209_v45 = vld [vmem:[%s2551_s5 + $0xc8] sm:$0xff]  ;;  %1023 = vmatprep.mubr.bf16.mxu0 %v1735_v43  ;;  %1063 = vmatprep.mubr.bf16.mxu1 %v1738_v46  ;;  %v1210_v50 = vld [vmem:[%s2551_s5 + $0xd0] sm:$0xff] }
  0x52   :  { %713 = vperm.xlu0 %1713, %v647_v59   ;;  %v667_v49 = vld [vmem:[%s2550_s4 + $0xe0] sm:$0xff]  ;;  %v668_v52 = vld [vmem:[%s2550_s4 + $0xe8] sm:$0xff]  ;;  %v1211_v53 = vld [vmem:[%s2551_s5 + $0xd8] sm:$0xff] }
  0x53   :  { %718 = vperm.xlu1 %1714, %v648_v60   ;;  %v669_v55 = vld [vmem:[%s2550_s4 + $0xf0] sm:$0xff]  ;;  %v1212_v56 = vld [vmem:[%s2551_s5 + $0xe0] sm:$0xff]  ;;  %v670_v59 = vld [vmem:[%s2550_s4 + $0xf8] sm:$0xff] }
  0x54   :  { %v1213_v60 = vld [vmem:[%s2551_s5 + $0xe8] sm:$0xff] }
  0x56   :  { %723 = vperm.xlu0 %1713, %v649_v61  }
  0x57   :  { %728 = vperm.xlu1 %1714, %v650_v62   ;;  %v1214_v62 = vld [vmem:[%s2551_s5 + $0xf0] sm:$0xff] }
  0x5a   :  { %733 = vperm.xlu0 %1713, %v651_v63   ;;  %v1215_v63 = vld [vmem:[%s2551_s5 + $0xf8] sm:$0xff] }
  0x5b   :  { %738 = vperm.xlu1 %1714, %v652_v0  }
  0x5e   :  { %743 = vperm.xlu0 %1713, %v653_v1  }
  0x5f   :  { %748 = vperm.xlu1 %1714, %v654_v2  }
  0x62   :  { %753 = vperm.xlu0 %1713, %v655_v3  }
  0x63   :  { %758 = vperm.xlu1 %1714, %v656_v4  }
  0x66   :  { %763 = vperm.xlu0 %1713, %v657_v5  }
  0x67   :  { %768 = vperm.xlu1 %1714, %v658_v6  }
  0x6a   :  { %773 = vperm.xlu0 %1713, %v659_v7  }
  0x6b   :  { %778 = vperm.xlu1 %1714, %v660_v8  }
  0x6e   :  { %783 = vperm.xlu0 %1713, %v661_v9  }
  0x6f   :  { %788 = vperm.xlu1 %1714, %v662_v10  }
  0x72   :  { %793 = vperm.xlu0 %1713, %v663_v11  }
  0x73   :  { %798 = vperm.xlu1 %1714, %v664_v12  }
  0x76   :  { %803 = vperm.xlu0 %1713, %v665_v13  }
  0x77   :  { %808 = vperm.xlu1 %1714, %v666_v14  }
  0x7a   :  { %1218 = vperm.xlu0 %1713, %v1184_v15  }
  0x7b   :  { %1223 = vperm.xlu1 %1714, %v1185_v16  }
  0x7e   :  { %1228 = vperm.xlu0 %1713, %v1186_v17  }
  0x7f   :  { %1233 = vperm.xlu1 %1714, %v1187_v18  }
  0x81   :  { %v2157_v35 = vpop.permute.xlu0 %179 }
  0x82   :  { %1238 = vperm.xlu0 %1713, %v1188_v19   ;;  %v2159_v36 = vpop.permute.xlu1 %99 }
  0x83   :  { %1243 = vperm.xlu1 %1714, %v1189_v20  }
  0x85   :  { %v2167_v39 = vpop.permute.xlu0 %184 }
  0x86   :  { %1248 = vperm.xlu0 %1713, %v1190_v21   ;;  %v105_v42 = vpop.permute.xlu1 %104 }
  0x87   :  { %1253 = vperm.xlu1 %1714, %v1191_v22  }
  0x89   :  { %v2187_v47 = vpop.permute.xlu0 %189 }
  0x8a   :  { %1258 = vperm.xlu0 %1713, %v1192_v23   ;;  %v2189_v48 = vpop.permute.xlu1 %194 }
  0x8b   :  { %1263 = vperm.xlu1 %1714, %v1193_v24  }
  0x8d   :  { %v110_v51 = vpop.permute.xlu0 %109 }
  0x8e   :  { %1268 = vperm.xlu0 %1713, %v1194_v25   ;;  %v115_v54 = vpop.permute.xlu1 %114 }
  0x8f   :  { %1273 = vperm.xlu1 %1714, %v1195_v26  }
  0x91   :  { %v2209_v57 = vpop.permute.xlu0 %199 }
  0x92   :  { %1278 = vperm.xlu0 %1713, %v1196_v27   ;;  %v2211_v58 = vpop.permute.xlu1 %204 }
  0x93   :  { %1283 = vperm.xlu1 %1714, %v1197_v28  }
  0x95   :  { %v120_v61 = vpop.permute.xlu0 %119 }
  0x96   :  { %1288 = vperm.xlu0 %1713, %v1198_v29   ;;  %v125_v0 = vpop.permute.xlu1 %124 }
  0x97   :  { %1293 = vperm.xlu1 %1714, %v1199_v30  }
  0x99   :  { %v2225_v1 = vpop.permute.xlu0 %209 }
  0x9a   :  { %1298 = vperm.xlu0 %1713, %v1200_v31   ;;  %v2227_v2 = vpop.permute.xlu1 %214 }
  0x9b   :  { %1303 = vperm.xlu1 %1714, %v1201_v32  }
  0x9d   :  { %v130_v3 = vpop.permute.xlu0 %129 }
  0x9e   :  { %1308 = vperm.xlu0 %1713, %v1202_v33   ;;  %v135_v4 = vpop.permute.xlu1 %134 }
  0x9f   :  { %1313 = vperm.xlu1 %1714, %v1203_v34  }
  0xa1   :  { %v2229_v5 = vpop.permute.xlu0 %219 }
  0xa2   :  { %1318 = vperm.xlu0 %1713, %v1204_v37   ;;  %v2231_v6 = vpop.permute.xlu1 %224 }
  0xa3   :  { %1323 = vperm.xlu1 %1714, %v1205_v38  }
  0xa5   :  { %v140_v7 = vpop.permute.xlu0 %139 }
  0xa6   :  { %1328 = vperm.xlu0 %1713, %v1206_v40   ;;  %v145_v8 = vpop.permute.xlu1 %144 }
  0xa7   :  { %1333 = vperm.xlu1 %1714, %v1207_v41  }
  0xa9   :  { %v2233_v9 = vpop.permute.xlu0 %229 }
  0xaa   :  { %1338 = vperm.xlu0 %1713, %v1208_v44   ;;  %v2235_v10 = vpop.permute.xlu1 %234 }
  0xab   :  { %1343 = vperm.xlu1 %1714, %v1209_v45  }
  0xad   :  { %v150_v11 = vpop.permute.xlu0 %149 }
  0xae   :  { %813 = vperm.xlu0 %1713, %v667_v49   ;;  %v155_v15 = vpop.permute.xlu1 %154 }
  0xaf   :  { %1348 = vperm.xlu1 %1714, %v1210_v50  }
  0xb1   :  { %v2238_v23 = vpop.permute.xlu0 %239 }
  0xb2   :  { %818 = vperm.xlu0 %1713, %v668_v52   ;;  %v2242_v27 = vpop.permute.xlu1 %244 }
  0xb3   :  { %1353 = vperm.xlu1 %1714, %v1211_v53  }
  0xb6   :  { %823 = vperm.xlu0 %1713, %v669_v55  }
  0xb7   :  { %1358 = vperm.xlu1 %1714, %v1212_v56  }
  0xba   :  { %828 = vperm.xlu0 %1713, %v670_v59  }
  0xbb   :  { %1363 = vperm.xlu1 %1714, %v1213_v60  }
  0xbe   :  { %1368 = vperm.xlu0 %1713, %v1214_v62  }
  0xbf   :  { %1373 = vperm.xlu1 %1714, %v1215_v63  }
  0xdf   :  { %v1665_v12 = vpop.f32.mrb[0].mxu0 }
  0xe0   :  { %v441_v13 = vadd.f32 %v1665_v12, %v110_v51  ;;  %v432_v14 = vpop.f32.mrb[1].mxu0 }
  0xe1   :  { %v1666_v16 = vpop.f32.mrb[2].mxu0  ;;  %v433_v17 = vadd.f32 %v432_v14, %v2159_v36  ;;  %v160_v36 = vpop.permute.xlu0 %159 }
  0xe2   :  { %v444_v18 = vadd.f32 %v1666_v16, %v115_v54  ;;  %v435_v19 = vpop.f32.mrb[3].mxu0  ;;  %v561_v20 = vmax.f32 %v441_v13, 0.0 }
  0xe3   :  { %v436_v22 = vadd.f32 %v435_v19, %v105_v42  ;;  %v559_v24 = vmax.f32 %v433_v17, 0.0  ;;  %v165_v42 = vpop.permute.xlu1 %164 }
  0xe4   :  { %v562_v21 = vmax.f32 %v444_v18, 0.0 }
  0xe5   :  { %v560_v26 = vmax.f32 %v436_v22, 0.0  ;;  %v2250_v52 = vpop.permute.xlu0 %249 }
  0xe6   :  { %v2240_v25 = vpack.c.bf16 %v562_v21, %v561_v20 }
  0xe7   :  { %v1669_v28 = vpop.f32.mrb[4].mxu0  ;;  %v2244_v29 = vpack.c.bf16 %v560_v26, %v559_v24  ;;  %v2252_v56 = vpop.permute.xlu1 %254 }
  0xe8   :  { %v457_v30 = vadd.f32 %v1669_v28, %v130_v3  ;;  %v448_v31 = vpop.f32.mrb[5].mxu0 }
  0xe9   :  { %v1670_v32 = vpop.f32.mrb[6].mxu0  ;;  %v449_v33 = vadd.f32 %v448_v31, %v120_v61 }
  0xea   :  { %v460_v34 = vadd.f32 %v1670_v32, %v135_v4  ;;  %v451_v37 = vpop.f32.mrb[7].mxu0  ;;  %v565_v38 = vmax.f32 %v457_v30, 0.0  ;;  %v170_v4 = vpop.permute.xlu0 %169 }
  0xeb   :  { %v452_v41 = vadd.f32 %v451_v37, %v125_v0  ;;  %v563_v43 = vmax.f32 %v449_v33, 0.0  ;;  %v175_v16 = vpop.permute.xlu1 %174 }
  0xec   :  { %v566_v40 = vmax.f32 %v460_v34, 0.0 }
  0xed   :  { %v564_v45 = vmax.f32 %v452_v41, 0.0 }
  0xee   :  { %v2246_v44 = vpack.c.bf16 %v566_v40, %v565_v38 }
  0xef   :  { %v1673_v46 = vpop.f32.mrb[8].mxu0  ;;  %v2248_v49 = vpack.c.bf16 %v564_v45, %v563_v43 }
  0xf0   :  { %v473_v50 = vadd.f32 %v1673_v46, %v150_v11  ;;  %v464_v51 = vpop.f32.mrb[9].mxu0 }
  0xf1   :  { %v1674_v53 = vpop.f32.mrb[10].mxu0  ;;  %v465_v54 = vadd.f32 %v464_v51, %v140_v7 }
  0xf2   :  { %v476_v55 = vadd.f32 %v1674_v53, %v155_v15  ;;  %v467_v59 = vpop.f32.mrb[11].mxu0  ;;  %v569_v60 = vmax.f32 %v473_v50, 0.0 }
  0xf3   :  { %v468_v62 = vadd.f32 %v467_v59, %v145_v8  ;;  %v567_v63 = vmax.f32 %v465_v54, 0.0 }
  0xf4   :  { %v570_v61 = vmax.f32 %v476_v55, 0.0 }
  0xf5   :  { %v568_v3 = vmax.f32 %v468_v62, 0.0 }
  0xf6   :  { %v2254_v0 = vpack.c.bf16 %v570_v61, %v569_v60 }
  0xf7   :  { %v1677_v12 = vpop.f32.mrb[12].mxu0  ;;  %v2256_v13 = vpack.c.bf16 %v568_v3, %v567_v63 }
  0xf8   :  { %v489_v11 = vadd.f32 %v1677_v12, %v170_v4  ;;  %v480_v14 = vpop.f32.mrb[13].mxu0 }
  0xf9   :  { %v1678_v17 = vpop.f32.mrb[14].mxu0  ;;  %v481_v7 = vadd.f32 %v480_v14, %v160_v36 }
  0xfa   :  { %v492_v15 = vadd.f32 %v1678_v17, %v175_v16  ;;  %v483_v18 = vpop.f32.mrb[15].mxu0  ;;  %v573_v19 = vmax.f32 %v489_v11, 0.0 }
  0xfb   :  { %v484_v21 = vadd.f32 %v483_v18, %v165_v42  ;;  %v571_v22 = vmax.f32 %v481_v7, 0.0 }
  0xfc   :  { %v574_v20 = vmax.f32 %v492_v15, 0.0 }
  0xfd   :  { %v572_v24 = vmax.f32 %v484_v21, 0.0 }
  0xfe   :  { %v2258_v8 = vpack.c.bf16 %v574_v20, %v573_v19 }
  0xff   :  { %v1681_v26 = vpop.f32.mrb[16].mxu0  ;;  %v2260_v28 = vpack.c.bf16 %v572_v24, %v571_v22  ;;  %v1743_v22 = vld [vmem:[%s2549_s3 + $0x10] ss:$8 sps:$4 sm:$0xff]   ;;  %v1745_v24 = vld [vmem:[%s2549_s3 + $0x24] ss:$8 sps:$4 sm:$0xff]  }
 0x100   :  { %v505_v30 = vadd.f32 %v1681_v26, %v2187_v47  ;;  %v496_v31 = vpop.f32.mrb[17].mxu0  ;;  %v1747_v26 = vld [vmem:[%s2549_s3 + $0x74] ss:$8 sps:$4 sm:$0xff]  }
 0x101   :  { %v1682_v32 = vpop.f32.mrb[18].mxu0  ;;  %v497_v33 = vadd.f32 %v496_v31, %v2157_v35  ;;  %v1751_v31 = vld [vmem:[%s2549_s3 + $0x34] ss:$8 sps:$4 sm:$0xff]  }
 0x102   :  { %v508_v34 = vadd.f32 %v1682_v32, %v2189_v48  ;;  %v499_v36 = vpop.f32.mrb[19].mxu0  ;;  %v577_v37 = vmax.f32 %v505_v30, 0.0  ;;  %v1750_v30 = vld [vmem:[%s2549_s3 + $0x70] ss:$8 sps:$4 sm:$0xff]   ;;  %v1753_v32 = vld [vmem:[%s2549_s3 + $0x84] ss:$8 sps:$4 sm:$0xff]  }
 0x103   :  { %v500_v40 = vadd.f32 %v499_v36, %v2167_v39  ;;  %v575_v41 = vmax.f32 %v497_v33, 0.0  ;;  %v1755_v33 = vld [vmem:[%s2549_s3 + $0x30] ss:$8 sps:$4 sm:$0xff]   ;;  %v1757_v36 = vld [vmem:[%s2549_s3 + $0x44] ss:$8 sps:$4 sm:$0xff]  }
 0x104   :  { %v578_v38 = vmax.f32 %v508_v34, 0.0  ;;  %v1756_v34 = vld [vmem:[%s2549_s3 + $0x80] ss:$8 sps:$4 sm:$0xff]  }
 0x105   :  { %v576_v43 = vmax.f32 %v500_v40, 0.0  ;;  %v1762_v40 = vld [vmem:[%s2549_s3 + $0x90] ss:$8 sps:$4 sm:$0xff]  }
 0x106   :  { %v600_v42 = vpack.c.bf16 %v578_v38, %v577_v37  ;;  %v1759_v37 = vld [vmem:[%s2549_s3 + $0x94] ss:$8 sps:$4 sm:$0xff]   ;;  %v1761_v38 = vld [vmem:[%s2549_s3 + $0x40] ss:$8 sps:$4 sm:$0xff]  }
 0x107   :  { %v1685_v45 = vpop.f32.mrb[20].mxu0  ;;  %v599_v46 = vpack.c.bf16 %v576_v43, %v575_v41  ;;  %v1763_v41 = vld [vmem:[%s2549_s3 + $0xa4] ss:$8 sps:$4 sm:$0xff]   ;;  %v1766_v43 = vld [vmem:[%s2549_s3 + $0xb4] ss:$8 sps:$4 sm:$0xff]  }
 0x108   :  { %v521_v50 = vadd.f32 %v1685_v45, %v2225_v1  ;;  %v512_v51 = vpop.f32.mrb[21].mxu0  ;;  %v1768_v45 = vld [vmem:[%s2549_s3 + $0xb0] ss:$8 sps:$4 sm:$0xff]  }
 0x109   :  { %v1686_v47 = vpop.f32.mrb[22].mxu0  ;;  %v513_v53 = vadd.f32 %v512_v51, %v2209_v57  ;;  %1547 = vmatprep.subr.bf16.mxu0 %v599_v46  ;;  %1695 = vmatprep.subr.bf16.mxu1 %v599_v46  ;;  %v1769_v46 = vld [vmem:[%s2549_s3 + $0xc4] ss:$8 sps:$4 sm:$0xff]   ;;  %v1772_v51 = vld [vmem:[%s2549_s3 + $0xd4] ss:$8 sps:$4 sm:$0xff]  }
 0x10a   :  { %v524_v35 = vadd.f32 %v1686_v47, %v2227_v2  ;;  %v515_v48 = vpop.f32.mrb[23].mxu0  ;;  %1548 = vmatpush3.bf16.msra.mxu0 %v2244_v29  ;;  %1703 = vmatpush3.bf16.msra.mxu1 %v2244_v29  ;;  %v581_v39 = vmax.f32 %v521_v50, 0.0  ;;  %v1771_v50 = vld [vmem:[%s2549_s3 + $0xc0] ss:$8 sps:$4 sm:$0xff]   ;;  %v1774_v47 = vld [vmem:[%s2549_s3 + $0xd0] ss:$8 sps:$4 sm:$0xff]  }
 0x10b   :  { %v516_v55 = vadd.f32 %v515_v48, %v2211_v58  ;;  %1549 = vmatprep.subr.bf16.mxu0 %v600_v42  ;;  %1696 = vmatprep.subr.bf16.mxu1 %v600_v42  ;;  %v579_v1 = vmax.f32 %v513_v53, 0.0  ;;  %v1765_v42 = vld [vmem:[%s2549_s3 + $0xa0] ss:$8 sps:$4 sm:$0xff]   ;;  %v1775_v53 = vld [vmem:[%s2549_s3 + $0xe4] ss:$8 sps:$4 sm:$0xff]  }
 0x10c   :  { %v582_v54 = vmax.f32 %v524_v35, 0.0  ;;  %v1777_v35 = vld [vmem:[%s2549_s3 + $0xe0] ss:$8 sps:$4 sm:$0xff]   ;;  %v1778_v48 = vld [vmem:[%s2549_s3 + $0xf4] ss:$8 sps:$4 sm:$0xff]  }
 0x10d   :  { %v580_v60 = vmax.f32 %v516_v55, 0.0  ;;  %v679_v55 = vpop.permute.xlu1 %678 }
 0x10e   :  { %v602_v59 = vpack.c.bf16 %v582_v54, %v581_v39  ;;  %1550 = vmatpush3.bf16.msra.mxu0 %v2240_v25  ;;  %1704 = vmatpush3.bf16.msra.mxu1 %v2240_v25  ;;  %v1780_v39 = vld [vmem:[%s2549_s3 + $0xf0] ss:$8 sps:$4 sm:$0xff]   ;;  %v674_v54 = vpop.permute.xlu0 %673 }
 0x10f   :  { %v1689_v57 = vpop.f32.mrb[24].mxu0  ;;  %v601_v2 = vpack.c.bf16 %v580_v60, %v579_v1 }
 0x110   :  { %v537_v61 = vadd.f32 %v1689_v57, %v2233_v9  ;;  %v528_v62 = vpop.f32.mrb[25].mxu0 }
 0x111   :  { %v1690_v63 = vpop.f32.mrb[26].mxu0  ;;  %v529_v29 = vadd.f32 %v528_v62, %v2229_v5  ;;  %1551 = vmatprep.subr.bf16.mxu0 %v601_v2  ;;  %1697 = vmatprep.subr.bf16.mxu1 %v601_v2 }
 0x112   :  { %v540_v3 = vadd.f32 %v1690_v63, %v2235_v10  ;;  %v531_v58 = vpop.f32.mrb[27].mxu0  ;;  %1552 = vmatpush3.bf16.msra.mxu0 %v2248_v49  ;;  %1705 = vmatpush3.bf16.msra.mxu1 %v2248_v49  ;;  %v585_v4 = vmax.f32 %v537_v61, 0.0  ;;  %v2384_v1 = vpop.permute.xlu0 %683 }
 0x113   :  { %v532_v25 = vadd.f32 %v531_v58, %v2231_v6  ;;  %1553 = vmatprep.subr.bf16.mxu0 %v602_v59  ;;  %1698 = vmatprep.subr.bf16.mxu1 %v602_v59  ;;  %v583_v9 = vmax.f32 %v529_v29, 0.0  ;;  %v2386_v59 = vpop.permute.xlu1 %688 }
 0x114   :  { %v586_v12 = vmax.f32 %v540_v3, 0.0 }
 0x115   :  { %v584_v14 = vmax.f32 %v532_v25, 0.0 }
 0x116   :  { %v604_v11 = vpack.c.bf16 %v586_v12, %v585_v4  ;;  %1554 = vmatpush3.bf16.msra.mxu0 %v2246_v44  ;;  %1706 = vmatpush3.bf16.msra.mxu1 %v2246_v44  ;;  %v2388_v60 = vpop.permute.xlu0 %693 }
 0x117   :  { %v1693_v5 = vpop.f32.mrb[28].mxu0  ;;  %v603_v10 = vpack.c.bf16 %v584_v14, %v583_v9  ;;  %v2390_v57 = vpop.permute.xlu1 %698 }
 0x118   :  { %v553_v16 = vadd.f32 %v1693_v5, %v2250_v52  ;;  %v544_v17 = vpop.f32.mrb[29].mxu0 }
 0x119   :  { %v1694_v7 = vpop.f32.mrb[30].mxu0  ;;  %v545_v49 = vadd.f32 %v544_v17, %v2238_v23  ;;  %1555 = vmatprep.subr.bf16.mxu0 %v603_v10  ;;  %1699 = vmatprep.subr.bf16.mxu1 %v603_v10 }
 0x11a   :  { %v556_v15 = vadd.f32 %v1694_v7, %v2252_v56  ;;  %v547_v6 = vpop.f32.mrb[31].mxu0  ;;  %1556 = vmatpush3.bf16.msra.mxu0 %v2256_v13  ;;  %1707 = vmatpush3.bf16.msra.mxu1 %v2256_v13  ;;  %v589_v18 = vmax.f32 %v553_v16, 0.0  ;;  %v1736_v56 = vld [vmem:[%s2549_s3 + $0x50] ss:$8 sps:$4 sm:$0xff]   ;;  %v1741_v13 = vld [vmem:[%s2549_s3 + $0x64] ss:$8 sps:$4 sm:$0xff]   ;;  %v2392_v2 = vpop.permute.xlu0 %703 }
 0x11b   :  { %v548_v44 = vadd.f32 %v547_v6, %v2242_v27  ;;  %1557 = vmatprep.subr.bf16.mxu0 %v604_v11  ;;  %1700 = vmatprep.subr.bf16.mxu1 %v604_v11  ;;  %v587_v52 = vmax.f32 %v545_v49, 0.0  ;;  %v1733_v27 = vld [vmem:[%s2549_s3] ss:$8 sps:$4 sm:$0xff]   ;;  %v2394_v61 = vpop.permute.xlu1 %708 }
 0x11c   :  { %v590_v19 = vmax.f32 %v556_v15, 0.0 }
 0x11d   :  { %v588_v21 = vmax.f32 %v548_v44, 0.0 }
 0x11e   :  { %v606_v20 = vpack.c.bf16 %v590_v19, %v589_v18  ;;  %1558 = vmatpush3.bf16.msra.mxu0 %v2254_v0  ;;  %1708 = vmatpush3.bf16.msra.mxu1 %v2254_v0  ;;  %v1739_v0 = vld [vmem:[%s2549_s3 + $0x14] ss:$8 sps:$4 sm:$0xff]   ;;  %v2396_v62 = vpop.permute.xlu0 %713 }
 0x11f   :  { %v605_v23 = vpack.c.bf16 %v588_v21, %v587_v52  ;;  %v2398_v63 = vpop.permute.xlu1 %718 }
 0x121   :  { %1559 = vmatprep.subr.bf16.mxu0 %v605_v23  ;;  %1701 = vmatprep.subr.bf16.mxu1 %v605_v23 }
 0x122   :  { %1560 = vmatpush3.bf16.msra.mxu0 %v2260_v28  ;;  %1709 = vmatpush3.bf16.msra.mxu1 %v2260_v28  ;;  %v1749_v28 = vld [vmem:[%s2549_s3 + $0x20] ss:$8 sps:$4 sm:$0xff]   ;;  %v2400_v29 = vpop.permute.xlu0 %723 }
 0x123   :  { %1561 = vmatprep.subr.bf16.mxu0 %v606_v20  ;;  %1702 = vmatprep.subr.bf16.mxu1 %v606_v20  ;;  %v2402_v3 = vpop.permute.xlu1 %728 }
 0x126   :  { %1562 = vmatpush3.bf16.msra.mxu0 %v2258_v8  ;;  %1710 = vmatpush3.bf16.msra.mxu1 %v2258_v8  ;;  %v1744_v8 = vld [vmem:[%s2549_s3 + $0x60] ss:$8 sps:$4 sm:$0xff]   ;;  %v2404_v58 = vpop.permute.xlu0 %733 }
 0x127   :  { %v2406_v4 = vpop.permute.xlu1 %738 }
 0x129   :  { %1024 = vmatmul.mubr.bf16.vlgmr.msra.gmra.mrb[32].mxu0 %v1733_v27  ;;  %1064 = vmatmul.mubr.bf16.vlgmr.msra.gmra.mrb[0].mxu1 %v1736_v56 }
 0x12a   :  { %1031 = vmatprep.mubr.bf16.mxu0 %v1739_v0  ;;  %1071 = vmatprep.mubr.bf16.mxu1 %v1741_v13  ;;  %v2408_v12 = vpop.permute.xlu0 %743 }
 0x12b   :  { %v2410_v25 = vpop.permute.xlu1 %748 }
 0x12e   :  { %v2412_v9 = vpop.permute.xlu0 %753 }
 0x12f   :  { %v2414_v11 = vpop.permute.xlu1 %758 }
 0x131   :  { %1032 = vmatmul.mubr.bf16.gmra.mrb[36].mxu0 %v1743_v22  ;;  %1072 = vmatmul.mubr.bf16.gmra.mrb[4].mxu1 %v1744_v8 }
 0x132   :  { %1039 = vmatprep.mubr.bf16.mxu0 %v1745_v24  ;;  %1079 = vmatprep.mubr.bf16.mxu1 %v1747_v26  ;;  %v2416_v14 = vpop.permute.xlu0 %763 }
 0x133   :  { %v2418_v5 = vpop.permute.xlu1 %768 }
 0x136   :  { %v2420_v10 = vpop.permute.xlu0 %773 }
 0x137   :  { %v2422_v16 = vpop.permute.xlu1 %778 }
 0x139   :  { %1040 = vmatmul.mubr.bf16.gmra.mrb[40].mxu0 %v1749_v28  ;;  %1080 = vmatmul.mubr.bf16.gmra.mrb[8].mxu1 %v1750_v30 }
 0x13a   :  { %1047 = vmatprep.mubr.bf16.mxu0 %v1751_v31  ;;  %1087 = vmatprep.mubr.bf16.mxu1 %v1753_v32  ;;  %v2424_v17 = vpop.permute.xlu0 %783 }
 0x13b   :  { %v2426_v7 = vpop.permute.xlu1 %788 }
 0x13e   :  { %v2428_v49 = vpop.permute.xlu0 %793 }
 0x13f   :  { %v2430_v15 = vpop.permute.xlu1 %798 }
 0x141   :  { %1048 = vmatmul.mubr.bf16.gmra.mrb[44].mxu0 %v1755_v33  ;;  %1088 = vmatmul.mubr.bf16.gmra.mrb[12].mxu1 %v1756_v34 }
 0x142   :  { %1055 = vmatprep.mubr.bf16.mxu0 %v1757_v36  ;;  %1095 = vmatprep.mubr.bf16.mxu1 %v1759_v37  ;;  %v2432_v6 = vpop.permute.xlu0 %803 }
 0x143   :  { %v2434_v18 = vpop.permute.xlu1 %808 }
 0x146   :  { %v1219_v19 = vpop.permute.xlu0 %1218 }
 0x147   :  { %v1224_v44 = vpop.permute.xlu1 %1223 }
 0x149   :  { %1056 = vmatmul.mubr.bf16.gmra.mrb[48].mxu0 %v1761_v38  ;;  %1096 = vmatmul.mubr.bf16.gmra.mrb[16].mxu1 %v1762_v40 }
 0x14a   :  { %1103 = vmatprep.mubr.bf16.mxu1 %v1763_v41  ;;  %v1229_v52 = vpop.permute.xlu0 %1228 }
 0x14b   :  { %v1234_v20 = vpop.permute.xlu1 %1233 }
 0x14e   :  { %v2436_v21 = vpop.permute.xlu0 %1238 }
 0x14f   :  { %v2438_v23 = vpop.permute.xlu1 %1243 }
 0x151   :  { %1104 = vmatmul.mubr.bf16.gmra.mrb[20].mxu1 %v1765_v42 }
 0x152   :  { %1111 = vmatprep.mubr.bf16.mxu1 %v1766_v43  ;;  %v2440_v27 = vpop.permute.xlu0 %1248 }
 0x153   :  { %v2442_v56 = vpop.permute.xlu1 %1253 }
 0x156   :  { %v2444_v0 = vpop.permute.xlu0 %1258 }
 0x157   :  { %v2446_v13 = vpop.permute.xlu1 %1263 }
 0x159   :  { %1112 = vmatmul.mubr.bf16.gmra.mrb[24].mxu1 %v1768_v45 }
 0x15a   :  { %1119 = vmatprep.mubr.bf16.mxu1 %v1769_v46  ;;  %v2452_v42 = vpop.permute.xlu0 %1268 }
 0x15b   :  { %v2454_v43 = vpop.permute.xlu1 %1273 }
 0x161   :  { %1120 = vmatmul.mubr.bf16.gmra.mrb[28].mxu1 %v1771_v50 }
 0x162   :  { %1127 = vmatprep.mubr.bf16.mxu1 %v1772_v51 }
 0x169   :  { %1128 = vmatmul.mubr.bf16.gmra.mrb[32].mxu1 %v1774_v47 }
 0x16a   :  { %1135 = vmatprep.mubr.bf16.mxu1 %v1775_v53 }
 0x171   :  { %1136 = vmatmul.mubr.bf16.gmra.mrb[36].mxu1 %v1777_v35 }
 0x172   :  { %1143 = vmatprep.mubr.bf16.mxu1 %v1778_v48 }
 0x179   :  { %1144 = vmatmul.mubr.bf16.gmra.mrb[40].mxu1 %v1780_v39 }
 0x1fc   :  { %v1563_v22 = vpop.f32.mrb[32].mxu0  ;;  %v1593_v8 = vpop.f32.mrb[0].mxu1 }
 0x1fd   :  { %v1564_v24 = vpop.f32.mrb[33].mxu0  ;;  %v1594_v26 = vpop.f32.mrb[1].mxu1 }
 0x1fe   :  { %v1565_v28 = vadd.f32 %v1564_v24, %v1563_v22  ;;  %v2448_v30 = vadd.f32 %v1594_v26, %v1593_v8  ;;  %v1566_v31 = vpop.f32.mrb[34].mxu0  ;;  %v1596_v32 = vpop.f32.mrb[2].mxu1 }
 0x1ff   :  { %v1567_v33 = vpop.f32.mrb[35].mxu0  ;;  %v1597_v34 = vpop.f32.mrb[3].mxu1 }
 0x200   :  { %v1026_v36 = vadd.f32 %v1565_v28, %v674_v54  ;;  %v1568_v37 = vadd.f32 %v1567_v33, %v1566_v31  ;;  %v2450_v38 = vadd.f32 %v1597_v34, %v1596_v32  ;;  %v2462_v34 = vpop.permute.xlu0 %1278 }
 0x202   :  { %v1152_v40 = vmax.f32 %v1026_v36, 0.0  ;;  %v1029_v41 = vadd.f32 %v1568_v37, %v679_v55 }
 0x204   :  { %v1153_v45 = vmax.f32 %v1029_v41, 0.0  ;;  %v1569_v46 = vpop.f32.mrb[36].mxu0  ;;  %v1599_v50 = vpop.f32.mrb[4].mxu1  ;;  %v1376_v53 = vmul.f32 %v1219_v19, %v1152_v40 }
 0x205   :  { %v1570_v51 = vpop.f32.mrb[37].mxu0  ;;  %v1600_v47 = vpop.f32.mrb[5].mxu1 }
 0x206   :  { %v1377_v35 = vmul.f32 %v1224_v44, %v1153_v45  ;;  %v1571_v48 = vadd.f32 %v1570_v51, %v1569_v46  ;;  %v2456_v39 = vadd.f32 %v1600_v47, %v1599_v50  ;;  %v1572_v54 = vpop.f32.mrb[38].mxu0  ;;  %v1602_v22 = vpop.f32.mrb[6].mxu1 }
 0x207   :  { %v1573_v8 = vpop.f32.mrb[39].mxu0  ;;  %v1603_v24 = vpop.f32.mrb[7].mxu1 }
 0x208   :  { %v1408_v26 = vadd.f32 %v1377_v35, %v1376_v53  ;;  %v1034_v55 = vadd.f32 %v1571_v48, %v2384_v1  ;;  %v1574_v28 = vadd.f32 %v1573_v8, %v1572_v54  ;;  %v2459_v31 = vadd.f32 %v1603_v24, %v1602_v22  ;;  %v2464_v19 = vpop.permute.xlu1 %1283 }
 0x20a   :  { %v1154_v32 = vmax.f32 %v1034_v55, 0.0  ;;  %v1037_v33 = vadd.f32 %v1574_v28, %v2386_v59  ;;  %v2472_v55 = vpop.permute.xlu0 %1288 }
 0x20c   :  { %v1378_v44 = vmul.f32 %v1229_v52, %v1154_v32  ;;  %v1155_v36 = vmax.f32 %v1037_v33, 0.0  ;;  %v1575_v37 = vpop.f32.mrb[40].mxu0  ;;  %v1605_v40 = vpop.f32.mrb[8].mxu1 }
 0x20d   :  { %v1576_v41 = vpop.f32.mrb[41].mxu0  ;;  %v1606_v45 = vpop.f32.mrb[9].mxu1 }
 0x20e   :  { %v1409_v46 = vadd.f32 %v1408_v26, %v1378_v44  ;;  %v1379_v50 = vmul.f32 %v1234_v20, %v1155_v36  ;;  %v1577_v51 = vadd.f32 %v1576_v41, %v1575_v37  ;;  %v2466_v1 = vadd.f32 %v1606_v45, %v1605_v40  ;;  %v1578_v47 = vpop.f32.mrb[42].mxu0  ;;  %v1608_v53 = vpop.f32.mrb[10].mxu1 }
 0x20f   :  { %v1579_v35 = vpop.f32.mrb[43].mxu0  ;;  %v1609_v48 = vpop.f32.mrb[11].mxu1 }
 0x210   :  { %v1410_v59 = vadd.f32 %v1409_v46, %v1379_v50  ;;  %v1042_v54 = vadd.f32 %v1577_v51, %v2388_v60  ;;  %v1580_v22 = vadd.f32 %v1579_v35, %v1578_v47  ;;  %v2469_v8 = vadd.f32 %v1609_v48, %v1608_v53  ;;  %v2474_v26 = vpop.permute.xlu1 %1293 }
 0x212   :  { %v1156_v52 = vmax.f32 %v1042_v54, 0.0  ;;  %v1045_v24 = vadd.f32 %v1580_v22, %v2390_v57  ;;  %v2482_v54 = vpop.permute.xlu0 %1298 }
 0x214   :  { %v1380_v20 = vmul.f32 %v2436_v21, %v1156_v52  ;;  %v1157_v28 = vmax.f32 %v1045_v24, 0.0  ;;  %v1581_v32 = vpop.f32.mrb[44].mxu0  ;;  %v1611_v33 = vpop.f32.mrb[12].mxu1 }
 0x215   :  { %v1582_v44 = vpop.f32.mrb[45].mxu0  ;;  %v1612_v36 = vpop.f32.mrb[13].mxu1 }
 0x216   :  { %v1411_v37 = vadd.f32 %v1410_v59, %v1380_v20  ;;  %v1381_v60 = vmul.f32 %v2438_v23, %v1157_v28  ;;  %v1583_v40 = vadd.f32 %v1582_v44, %v1581_v32  ;;  %v2478_v41 = vadd.f32 %v1612_v36, %v1611_v33  ;;  %v1584_v45 = vpop.f32.mrb[46].mxu0  ;;  %v1614_v46 = vpop.f32.mrb[14].mxu1 }
 0x217   :  { %v1585_v57 = vpop.f32.mrb[47].mxu0  ;;  %v1615_v50 = vpop.f32.mrb[15].mxu1 }
 0x218   :  { %v1412_v51 = vadd.f32 %v1411_v37, %v1381_v60  ;;  %v1050_v47 = vadd.f32 %v1583_v40, %v2392_v2  ;;  %v1586_v53 = vadd.f32 %v1585_v57, %v1584_v45  ;;  %v1616_v21 = vadd.f32 %v1615_v50, %v1614_v46  ;;  %v2484_v59 = vpop.permute.xlu1 %1303  ;;  %v2491_v50 = vpop.permute.xlu0 %1308 }
 0x219   :  { %v1066_v40 = vadd.f32 %v2448_v30, %v2400_v29 }
 0x21a   :  { %v1158_v35 = vmax.f32 %v1050_v47, 0.0  ;;  %v1053_v48 = vadd.f32 %v1586_v53, %v2394_v61 }
 0x21c   :  { %v1382_v23 = vmul.f32 %v2440_v27, %v1158_v35  ;;  %v1159_v22 = vmax.f32 %v1053_v48, 0.0  ;;  %v1587_v52 = vpop.f32.mrb[48].mxu0  ;;  %v1617_v24 = vpop.f32.mrb[16].mxu1  ;;  %v1162_v35 = vmax.f32 %v1066_v40, 0.0  ;;  %v1074_v48 = vadd.f32 %v2456_v39, %v2404_v58 }
 0x21d   :  { %v1588_v20 = vpop.f32.mrb[49].mxu0  ;;  %v1618_v28 = vpop.f32.mrb[17].mxu1 }
 0x21e   :  { %v1413_v32 = vadd.f32 %v1412_v51, %v1382_v23  ;;  %v1383_v33 = vmul.f32 %v2442_v56, %v1159_v22  ;;  %v1589_v2 = vadd.f32 %v1588_v20, %v1587_v52  ;;  %v1619_v44 = vadd.f32 %v1618_v28, %v1617_v24  ;;  %v1590_v36 = vpop.f32.mrb[50].mxu0  ;;  %v1620_v37 = vpop.f32.mrb[18].mxu1 }
 0x21f   :  { %v1591_v60 = vpop.f32.mrb[51].mxu0  ;;  %v1621_v61 = vpop.f32.mrb[19].mxu1  ;;  %v1069_v51 = vadd.f32 %v2450_v38, %v2402_v3  ;;  %v1077_v23 = vadd.f32 %v2459_v31, %v2406_v4  ;;  %v1082_v20 = vadd.f32 %v2466_v1, %v2408_v12  ;;  %v1386_v58 = vmul.f32 %v2452_v42, %v1162_v35 }
 0x220   :  { %v1414_v45 = vadd.f32 %v1413_v32, %v1383_v33  ;;  %v1058_v27 = vadd.f32 %v1589_v2, %v2396_v62  ;;  %v1592_v46 = vadd.f32 %v1591_v60, %v1590_v36  ;;  %v1622_v57 = vadd.f32 %v1621_v61, %v1620_v37  ;;  %v2496_v53 = vpop.permute.xlu1 %1313  ;;  %v1319_v32 = vpop.permute.xlu0 %1318 }
 0x221   :  { %v1163_v52 = vmax.f32 %v1069_v51, 0.0  ;;  %v1165_v36 = vmax.f32 %v1077_v23, 0.0  ;;  %v1085_v31 = vadd.f32 %v2469_v8, %v2410_v25  ;;  %v1166_v37 = vmax.f32 %v1082_v20, 0.0 }
 0x222   :  { %v1160_v56 = vmax.f32 %v1058_v27, 0.0  ;;  %v1061_v47 = vadd.f32 %v1592_v46, %v2398_v63  ;;  %v1090_v12 = vadd.f32 %v2478_v41, %v2412_v9  ;;  %v1093_v46 = vadd.f32 %v1616_v21, %v2414_v11 }
 0x223   :  { %v1387_v4 = vmul.f32 %v2454_v43, %v1163_v52  ;;  %v1389_v42 = vmul.f32 %v2464_v19, %v1165_v36  ;;  %v1167_v27 = vmax.f32 %v1085_v31, 0.0  ;;  %v1390_v8 = vmul.f32 %v2472_v55, %v1166_v37 }
 0x224   :  { %v1384_v29 = vmul.f32 %v2444_v0, %v1160_v56  ;;  %v1161_v30 = vmax.f32 %v1061_v47, 0.0  ;;  %v1623_v62 = vpop.f32.mrb[20].mxu1  ;;  %v1164_v0 = vmax.f32 %v1074_v48, 0.0  ;;  %v1324_v2 = vpop.permute.xlu1 %1323  ;;  %v1098_v35 = vadd.f32 %v1619_v44, %v2416_v14 }
 0x225   :  { %v1624_v22 = vpop.f32.mrb[21].mxu1  ;;  %v1391_v48 = vmul.f32 %v2474_v26, %v1167_v27  ;;  %v1169_v19 = vmax.f32 %v1093_v46, 0.0 }
 0x226   :  { %v1415_v24 = vadd.f32 %v1414_v45, %v1384_v29  ;;  %v1385_v3 = vmul.f32 %v2446_v13, %v1161_v30  ;;  %v1625_v38 = vadd.f32 %v1624_v22, %v1623_v62  ;;  %v1626_v63 = vpop.f32.mrb[22].mxu1  ;;  %v1388_v60 = vmul.f32 %v2462_v34, %v1164_v0  ;;  %v1329_v45 = vpop.permute.xlu0 %1328 }
 0x227   :  { %v1627_v28 = vpop.f32.mrb[23].mxu1  ;;  %v1168_v34 = vmax.f32 %v1090_v12, 0.0  ;;  %v1101_v29 = vadd.f32 %v1622_v57, %v2418_v5  ;;  %v1170_v21 = vmax.f32 %v1098_v35, 0.0  ;;  %v1393_v44 = vmul.f32 %v2484_v59, %v1169_v19 }
 0x228   :  { %v1416_v39 = vadd.f32 %v1415_v24, %v1385_v3  ;;  %v1628_v33 = vadd.f32 %v1627_v28, %v1626_v63  ;;  %v1334_v25 = vpop.permute.xlu1 %1333  ;;  %v1106_v22 = vadd.f32 %v1625_v38, %v2420_v10 }
 0x229   :  { %v1392_v11 = vmul.f32 %v2482_v54, %v1168_v34  ;;  %v1171_v3 = vmax.f32 %v1101_v29, 0.0  ;;  %v1394_v54 = vmul.f32 %v2491_v50, %v1170_v21 }
 0x22a   :  { %v1417_v13 = vadd.f32 %v1416_v39, %v1386_v58  ;;  %v1339_v62 = vpop.permute.xlu0 %1338  ;;  %v1109_v24 = vadd.f32 %v1628_v33, %v2422_v16  ;;  %v1172_v58 = vmax.f32 %v1106_v22, 0.0 }
 0x22b   :  { %v1395_v39 = vmul.f32 %v2496_v53, %v1171_v3 }
 0x22c   :  { %v1418_v1 = vadd.f32 %v1417_v13, %v1387_v4  ;;  %v1629_v61 = vpop.f32.mrb[24].mxu1  ;;  %v1344_v52 = vpop.permute.xlu1 %1343  ;;  %v1173_v10 = vmax.f32 %v1109_v24, 0.0  ;;  %v1396_v31 = vmul.f32 %v1319_v32, %v1172_v58 }
 0x22d   :  { %v1630_v40 = vpop.f32.mrb[25].mxu1 }
 0x22e   :  { %v1419_v43 = vadd.f32 %v1418_v1, %v1388_v60  ;;  %v1631_v51 = vadd.f32 %v1630_v40, %v1629_v61  ;;  %v1632_v56 = vpop.f32.mrb[26].mxu1  ;;  %v814_v38 = vpop.permute.xlu0 %813  ;;  %v1397_v37 = vmul.f32 %v1324_v2, %v1173_v10 }
 0x22f   :  { %v1633_v47 = vpop.f32.mrb[27].mxu1 }
 0x230   :  { %v1420_v9 = vadd.f32 %v1419_v43, %v1389_v42  ;;  %v1634_v41 = vadd.f32 %v1633_v47, %v1632_v56  ;;  %v1114_v5 = vadd.f32 %v1631_v51, %v2424_v17  ;;  %v1349_v59 = vpop.permute.xlu1 %1348 }
 0x232   :  { %v1421_v30 = vadd.f32 %v1420_v9, %v1390_v8  ;;  %v1117_v33 = vadd.f32 %v1634_v41, %v2426_v7  ;;  %v1174_v36 = vmax.f32 %v1114_v5, 0.0  ;;  %v819_v27 = vpop.permute.xlu0 %818 }
 0x234   :  { %v1422_v23 = vadd.f32 %v1421_v30, %v1391_v48  ;;  %v1635_v55 = vpop.f32.mrb[28].mxu1  ;;  %v1175_v12 = vmax.f32 %v1117_v33, 0.0  ;;  %v1398_v40 = vmul.f32 %v1329_v45, %v1174_v36  ;;  %v1354_v32 = vpop.permute.xlu1 %1353 }
 0x235   :  { %v1636_v14 = vpop.f32.mrb[29].mxu1 }
 0x236   :  { %v1423_v26 = vadd.f32 %v1422_v23, %v1392_v11  ;;  %v1637_v63 = vadd.f32 %v1636_v14, %v1635_v55  ;;  %v1638_v20 = vpop.f32.mrb[30].mxu1  ;;  %v824_v41 = vpop.permute.xlu0 %823 }
 0x237   :  { %v1639_v57 = vpop.f32.mrb[31].mxu1 }
 0x238   :  { %v1424_v28 = vadd.f32 %v1423_v26, %v1393_v44  ;;  %v1640_v0 = vadd.f32 %v1639_v57, %v1638_v20  ;;  %v1122_v13 = vadd.f32 %v1637_v63, %v2428_v49  ;;  %v1399_v49 = vmul.f32 %v1334_v25, %v1175_v12  ;;  %v1359_v11 = vpop.permute.xlu1 %1358 }
 0x23a   :  { %v1425_v16 = vadd.f32 %v1424_v28, %v1394_v54  ;;  %v1125_v1 = vadd.f32 %v1640_v0, %v2430_v15  ;;  %v1176_v7 = vmax.f32 %v1122_v13, 0.0 }
 0x23c   :  { %v1426_v4 = vadd.f32 %v1425_v16, %v1395_v39  ;;  %v1641_v17 = vpop.f32.mrb[32].mxu1  ;;  %v1177_v8 = vmax.f32 %v1125_v1, 0.0  ;;  %v1400_v34 = vmul.f32 %v1339_v62, %v1176_v7  ;;  %v829_v62 = vpop.permute.xlu0 %828 }
 0x23d   :  { %v1642_v60 = vpop.f32.mrb[33].mxu1  ;;  %v1364_v20 = vpop.permute.xlu1 %1363 }
 0x23e   :  { %v1427_v50 = vadd.f32 %v1426_v4, %v1396_v31  ;;  %v1643_v61 = vadd.f32 %v1642_v60, %v1641_v17  ;;  %v1644_v42 = vpop.f32.mrb[34].mxu1  ;;  %v1401_v48 = vmul.f32 %v1344_v52, %v1177_v8 }
 0x23f   :  { %v1645_v53 = vpop.f32.mrb[35].mxu1 }
 0x240   :  { %v1428_v46 = vadd.f32 %v1427_v50, %v1397_v37  ;;  %v1130_v43 = vadd.f32 %v1643_v61, %v2432_v6  ;;  %v1646_v51 = vadd.f32 %v1645_v53, %v1644_v42  ;;  %v1369_v33 = vpop.permute.xlu0 %1368  ;;  %v1446_v61 = vstv %s2552_s6 }
 0x241   :  { %v1374_v4 = vpop.permute.xlu1 %1373 }
 0x242   :  { %v1429_v56 = vadd.f32 %v1428_v46, %v1398_v40  ;;  %v1133_v2 = vadd.f32 %v1646_v51, %v2434_v18  ;;  %v1178_v35 = vmax.f32 %v1130_v43, 0.0 }
 0x244   :  { %v1430_v47 = vadd.f32 %v1429_v56, %v1399_v49  ;;  %v1647_v15 = vpop.f32.mrb[36].mxu1  ;;  %v1179_v19 = vmax.f32 %v1133_v2, 0.0  ;;  %v1402_v23 = vmul.f32 %v1349_v59, %v1178_v35 }
 0x245   :  { %v1648_v9 = vpop.f32.mrb[37].mxu1 }
 0x246   :  { %v1431_v45 = vadd.f32 %v1430_v47, %v1400_v34  ;;  %v1649_v29 = vadd.f32 %v1648_v9, %v1647_v15  ;;  %v1650_v30 = vpop.f32.mrb[38].mxu1  ;;  %v1403_v24 = vmul.f32 %v1354_v32, %v1179_v19 }
 0x247   :  { %v1651_v6 = vpop.f32.mrb[39].mxu1 }
 0x248   :  { %v1432_v21 = vadd.f32 %v1431_v45, %v1401_v48  ;;  %v1138_v22 = vadd.f32 %v1649_v29, %v814_v38  ;;  %v1652_v25 = vadd.f32 %v1651_v6, %v1650_v30 }
 0x24a   :  { %v1433_v55 = vadd.f32 %v1432_v21, %v1402_v23  ;;  %v1180_v18 = vmax.f32 %v1138_v22, 0.0  ;;  %v1141_v14 = vadd.f32 %v1652_v25, %v819_v27 }
 0x24c   :  { %v1434_v44 = vadd.f32 %v1433_v55, %v1403_v24  ;;  %v1404_v3 = vmul.f32 %v1359_v11, %v1180_v18  ;;  %v1181_v26 = vmax.f32 %v1141_v14, 0.0  ;;  %v1653_v63 = vpop.f32.mrb[40].mxu1 }
 0x24d   :  { %v1654_v52 = vpop.f32.mrb[41].mxu1 }
 0x24e   :  { %v1435_v5 = vadd.f32 %v1434_v44, %v1404_v3  ;;  %v1405_v57 = vmul.f32 %v1364_v20, %v1181_v26  ;;  %v1655_v54 = vadd.f32 %v1654_v52, %v1653_v63  ;;  %v1656_v28 = vpop.f32.mrb[42].mxu1 }
 0x24f   :  { %v1657_v58 = vpop.f32.mrb[43].mxu1 }
 0x250   :  { %v1436_v0 = vadd.f32 %v1435_v5, %v1405_v57  ;;  %v1146_v10 = vadd.f32 %v1655_v54, %v824_v41  ;;  %v1658_v38 = vadd.f32 %v1657_v58, %v1656_v28 }
 0x252   :  { %v1182_v39 = vmax.f32 %v1146_v10, 0.0  ;;  %v1149_v16 = vadd.f32 %v1658_v38, %v829_v62 }
 0x254   :  { %v1406_v59 = vmul.f32 %v1369_v33, %v1182_v39  ;;  %v1183_v36 = vmax.f32 %v1149_v16, 0.0 }
 0x256   :  { %v1437_v31 = vadd.f32 %v1436_v0, %v1406_v59  ;;  %v1407_v13 = vmul.f32 %v1374_v4, %v1183_v36 }
 0x258   :  { %v1438_v17 = vadd.f32 %v1437_v31, %v1407_v13 }
 0x25a   :  { %v1439_v37 = vrot.slane %v1438_v17, 4 }
 0x25c   :  { %v1440_v60 = vadd.f32 %v1439_v37, %v1438_v17 }
 0x25e   :  { %v1441_v50 = vrot.slane %v1440_v60, 2 }
 0x260   :  { %v1442_v12 = vadd.f32 %v1441_v50, %v1440_v60 }
 0x262   :  { %v1443_v1 = vrot.slane %v1442_v12, 1 }
 0x264   :  { %v1444_v42 = vadd.f32 %v1443_v1, %v1442_v12 }
 0x266   :  { %v1447_v40 = vadd.f32 %v1446_v61, %v1444_v42 }
 0x268   :  { %1448 = vst [vmem:[#allocation3] sm:$0x1] %v1447_v40 }
 0x269   :  { %1792 = shalt.err (!%p1789_p4)
}
 0x26a   :  { %s1793_s1 = scalar_lea.hbm %s2553_s7, 16 }
 0x26b   :  { %p1794_p5 = scmp.ne.s32.totalorder %s2553_s7, %s1793_s1  ;;  %p1797_p6 = scmp.lt.u32.totalorder %s1793_s1, %s2553_s7 }
 0x26d   :  { %p1799_p7 = pnand %p1797_p6, %p1794_p5 }
 0x26f   :  { %1802 = shalt.err (!%p1799_p7)
}
 0x270   :  { %1458 = dma.vmem_to_hbm [thread:$0]  %s1456_s10, 16, %s2553_s7, [#allocation4]  }
 0x271   :  { %1803 = dma.done.wait [#allocation4], 16  }
 0x272   :  { %1804 = vsyncadd [#allocation4], 4294967280 }
 0x273   :  { %1462 = vsyncpa [#allocation4], 1 }

</bundles_post_ra>
